<compile_context>
chip_gen: v5e
topology: v5e:2x2
jax: 0.10.0
libtpu: 0.0.40
codegen_flags: <defaults>
</compile_context>

<pallas_src>
import functools

import jax
import jax.numpy as jnp
from jax.experimental import pallas as pl
from jax.experimental.pallas import tpu as pltpu


def _vmem_budget_bytes():
    """Generation-aware VMEM budget: ~70% of physical capacity, capped at 96 MiB.
    (v5e/v6e: 128 MiB physical -> ~90 MiB; v7x: 64 MiB physical -> ~45 MiB)."""
    cap = 64 * 1024 * 1024  # conservative fallback = v7x physical VMEM per core
    try:
        info = pltpu.get_tpu_info()
        cap = int(getattr(info, "vmem_capacity_bytes", cap)) or cap
    except Exception:
        pass
    return min(96 * 1024 * 1024, int(cap * 0.7))


def _choose_tile_t(T, C, itemsize, budget):
    """Largest lane-dense T tile whose pass-2 working set (2x double-buffered
    input + output tiles) stays inside ~half the VMEM budget.  Prefers a single
    whole-T block (multi-MiB DMAs ~ 86% of HBM roofline); otherwise the largest
    power-of-two multiple of 128 that fits (cdiv grid handles non-divisible T)."""
    per_lane = 4 * C * max(int(itemsize), 2)       # working-set bytes per lane col
    cap = max(128, (budget // 2) // per_lane)
    cap = (cap // 128) * 128
    if T <= cap:
        return T                 # full-extent block (legal even if not 128-aligned)
    t = 128
    while t * 2 <= cap:
        t *= 2
    return t


def _acc_width(tile_t):
    """Fixed accumulator width, decoupled from tile_t (keeps region-0 VMEM small)."""
    for w in (512, 256, 128):
        if tile_t % w == 0:
            return w
    return tile_t


def _stats_kernel(n_ref, denom_ref, x_ref, lw_ref, bias_ref,
                  mu_ref, var_ref, scale_ref, shift_ref,
                  acc_sum, acc_sq, *, eps, tile_t, acc_w, c_blk):
    b = pl.program_id(1)
    ti = pl.program_id(2)
    nb = pl.num_programs(1)
    nt = pl.num_programs(2)
    n_sub = tile_t // acc_w

    @pl.when(jnp.logical_and(b == 0, ti == 0))
    def _init():
        acc_sum[...] = jnp.zeros_like(acc_sum)
        acc_sq[...] = jnp.zeros_like(acc_sq)

    n_b = n_ref[b]              # valid length of this batch row (SMEM scalar)
    t_start = ti * tile_t       # global time offset of this tile

    # Fast path: tile entirely inside the valid region -> no mask work at all.
    @pl.when(t_start + tile_t <= n_b)
    def _acc_fast():
        for k in range(n_sub):  # static, 128-lane-aligned sub-slices (free selects)
            xk = x_ref[0, :, k * acc_w:(k + 1) * acc_w].astype(jnp.float32)
            acc_sum[...] += xk
            acc_sq[...] += xk * xk

    # Boundary tile only: mask lanes >= (n_b - t_start).  Fully padded tiles and
    # any cdiv overhang past T (garbage reads) fall in here and get zeroed.
    @pl.when(jnp.logical_and(t_start < n_b, t_start + tile_t > n_b))
    def _acc_masked():
        lane = jax.lax.broadcasted_iota(jnp.int32, (c_blk, acc_w), 1)  # hoisted
        for k in range(n_sub):
            xk = x_ref[0, :, k * acc_w:(k + 1) * acc_w].astype(jnp.float32)
            xm = jnp.where(lane < (n_b - t_start - k * acc_w), xk, 0.0)
            acc_sum[...] += xm
            acc_sq[...] += xm * xm

    @pl.when(jnp.logical_and(b == nb - 1, ti == nt - 1))
    def _finalize():
        # denom == 0 would NaN in the reference too; guard it (int sum, so
        # max(.,1) only changes the all-empty case).
        denom = jnp.maximum(denom_ref[0].astype(jnp.float32), 1.0)
        s = jnp.sum(acc_sum[...], axis=-1, keepdims=True)              # (c_blk, 1)
        ss = jnp.sum(acc_sq[...], axis=-1, keepdims=True)              # (c_blk, 1)
        mu = s / denom
        # TODO(synk): for extreme |mu|/std ratios, accumulate around a per-channel
        # pilot mean (or Welford) to avoid cancellation in E[x^2] - mu^2.
        var = jnp.maximum(ss / denom - mu * mu, 0.0)
        inv = jax.lax.rsqrt(var + eps)
        # Fold the affine: y = x*scale + shift  (exp/rsqrt once per channel).
        scale = inv * jnp.exp(lw_ref[0])                               # (c_blk, 1)
        shift = bias_ref[0] - mu * scale                               # (c_blk, 1)
        mu_ref[0] = mu
        var_ref[0] = var
        scale_ref[0] = scale
        shift_ref[0] = shift


def _normalize_kernel(x_ref, scale_ref, shift_ref, y_ref):
    # One FMA per element; f32 scale/shift promote x as needed (no extra passes).
    y = x_ref[...].astype(jnp.float32) * scale_ref[...] + shift_ref[...]
    y_ref[...] = y.astype(y_ref.dtype)


def batchnorm_forward(x, N, log_weight, bias, *, eps=1e-5, tile_t=None):
    """Training-mode forward of the masked BatchNorm. Returns (y, mu, var)."""
    B, C, T = x.shape
    budget = _vmem_budget_bytes()
    if tile_t is None:
        tile_t = _choose_tile_t(T, C, x.dtype.itemsize, budget)
    tile_t = min(tile_t, T)
    nt = pl.cdiv(T, tile_t)
    acc_w = _acc_width(tile_t)

    # Channel blocking: lets the stats pass use both v7x TensorCores.
    n_cblk = 2 if (C >= 16 and C % 16 == 0) else 1
    c_blk = C // n_cblk

    n_i32 = N.reshape(B).astype(jnp.int32)
    denom_i32 = jnp.sum(n_i32).reshape(1)
    lw_f32 = log_weight.astype(jnp.float32)
    b_f32 = bias.astype(jnp.float32)

    # ---- Pass 1: masked per-channel sum / sum-of-squares -> mu, var, scale, shift.
    stats_kernel = functools.partial(
        _stats_kernel, eps=eps, tile_t=tile_t, acc_w=acc_w, c_blk=c_blk)
    cparam_out = pl.BlockSpec((1, c_blk, 1), lambda c, b, t, n, d: (0, c, 0))
    cparam_shape = jax.ShapeDtypeStruct((1, C, 1), jnp.float32)
    mu, var, scale, shift = pl.pallas_call(
        stats_kernel,
        out_shape=(cparam_shape, cparam_shape, cparam_shape, cparam_shape),
        grid_spec=pltpu.PrefetchScalarGridSpec(
            num_scalar_prefetch=2,                 # N (B,), denom (1,) -> SMEM
            grid=(n_cblk, B, nt),
            in_specs=[
                pl.BlockSpec((1, c_blk, tile_t), lambda c, b, t, n, d: (b, c, t)),  # x
                pl.BlockSpec((1, c_blk, 1), lambda c, b, t, n, d: (0, c, 0)),       # log_weight
                pl.BlockSpec((1, c_blk, 1), lambda c, b, t, n, d: (0, c, 0)),       # bias
            ],
            out_specs=(cparam_out, cparam_out, cparam_out, cparam_out),
            scratch_shapes=[
                pltpu.VMEM((c_blk, acc_w), jnp.float32),   # acc_sum (fixed width)
                pltpu.VMEM((c_blk, acc_w), jnp.float32),   # acc_sq
            ],
        ),
        compiler_params=pltpu.CompilerParams(
            # Channel blocks are independent -> parallel (megacore on v7x);
            # (B, T) feed one accumulator per channel block -> arbitrary.
            dimension_semantics=("parallel", "arbitrary", "arbitrary"),
            vmem_limit_bytes=budget,
        ),
    )(n_i32, denom_i32, x, lw_f32, b_f32)

    # ---- Pass 2: y = x * scale + shift (elementwise, fully parallel).
    y = pl.pallas_call(
        _normalize_kernel,
        out_shape=jax.ShapeDtypeStruct((B, C, T), x.dtype),
        grid=(B, nt),
        in_specs=[
            pl.BlockSpec((1, C, tile_t), lambda b, t: (b, 0, t)),   # x
            pl.BlockSpec((1, C, 1), lambda b, t: (0, 0, 0)),        # scale
            pl.BlockSpec((1, C, 1), lambda b, t: (0, 0, 0)),        # shift
        ],
        out_specs=pl.BlockSpec((1, C, tile_t), lambda b, t: (b, 0, t)),
        compiler_params=pltpu.CompilerParams(
            dimension_semantics=("parallel", "parallel"),
            vmem_limit_bytes=budget,
        ),
    )(x, scale, shift)

    return y, mu, var


def update_running_stats(running_mean, running_var, num_batches_tracked, mu, var,
                         momentum=0.1):
    # Plain-JAX glue reproducing the buffer-update side effect of training mode.
    first = num_batches_tracked == 0
    new_mean = jnp.where(first, mu, (1 - momentum) * running_mean + momentum * mu)
    new_var = jnp.where(first, var, (1 - momentum) * running_var + momentum * var)
    return new_mean, new_var, num_batches_tracked + 1


def reference_forward(x, N, log_weight, bias, eps=1e-5):
    m = (jnp.arange(x.shape[2])[None, :] < N[:, None])[:, None, :].astype(x.dtype)
    denom = jnp.sum(N).astype(x.dtype)
    mu = jnp.sum(x * m, axis=(0, 2), keepdims=True) / denom
    z = x - mu
    var = jnp.sum(z * z * m, axis=(0, 2), keepdims=True) / denom
    y = z * jax.lax.rsqrt(var + eps)
    return y * jnp.exp(log_weight) + bias


if __name__ == "__main__":
    key = jax.random.PRNGKey(0)

    def run_case(kkey, B, C, T, N_list, tile_t=None):
        kx, kw, kb = jax.random.split(kkey, 3)
        x = jax.random.normal(kx, (B, C, T), dtype=jnp.float32)
        N = jnp.array(N_list, dtype=jnp.int32)
        log_weight = 0.1 * jax.random.normal(kw, (1, C, 1), dtype=jnp.float32)
        bias = jax.random.normal(kb, (1, C, 1), dtype=jnp.float32)
        y, mu, var = batchnorm_forward(x, N, log_weight, bias, eps=1e-5,
                                       tile_t=tile_t)
        y = jax.block_until_ready(y)
        y_ref = reference_forward(x, N, log_weight, bias)
        assert jnp.allclose(y, y_ref, atol=3e-5, rtol=3e-5), (
            f"mismatch vs reference (B={B}, C={C}, T={T}, tile_t={tile_t})")
        return mu, var

    k1, k2 = jax.random.split(key)

    # Case A: auto tile (single large lane-dense block), narrow C.
    mu, var = run_case(k1, B=2, C=4, T=384, N_list=[100, 300])
    # Case B: forced small tile -> exercises tiled / masked-boundary /
    #         fully-padded-skip / accumulator sub-slice paths.
    run_case(k1, B=2, C=4, T=384, N_list=[100, 300], tile_t=128)
    # Case C: C=16 -> two channel blocks on the "parallel" axis (megacore on v7x).
    run_case(k2, B=2, C=16, T=256, N_list=[60, 256], tile_t=128)

    # Training-mode running-stat buffer update (plain JAX glue).
    running_mean = jnp.zeros((1, 4, 1), dtype=jnp.float32)
    running_var = jnp.ones((1, 4, 1), dtype=jnp.float32)
    num_batches_tracked = jnp.array(0, dtype=jnp.int32)
    running_mean, running_var, num_batches_tracked = update_running_stats(
        running_mean, running_var, num_batches_tracked, mu, var, momentum=0.1)
    jax.block_until_ready((running_mean, running_var))

    print("KERNEL_OK")
</pallas_src>

<mosaic_0001>
module attributes {stable_mosaic.version = 11 : i64} {
  func.func @_stats_kernel(%arg0: i32, %arg1: i32, %arg2: i32, %arg3: memref<2xi32, #tpu.memory_space<smem>>, %arg4: memref<1xi32, #tpu.memory_space<smem>>, %arg5: memref<1x4x384xf32, #tpu.memory_space<vmem>>, %arg6: memref<1x4x1xf32, #tpu.memory_space<vmem>>, %arg7: memref<1x4x1xf32, #tpu.memory_space<vmem>>, %arg8: memref<1x4x1xf32, #tpu.memory_space<vmem>>, %arg9: memref<1x4x1xf32, #tpu.memory_space<vmem>>, %arg10: memref<1x4x1xf32, #tpu.memory_space<vmem>>, %arg11: memref<1x4x1xf32, #tpu.memory_space<vmem>>, %arg12: memref<4x128xf32, #tpu.memory_space<vmem>>, %arg13: memref<4x128xf32, #tpu.memory_space<vmem>>) attributes {dimension_semantics = [#tpu.dimension_semantics<parallel>, #tpu.dimension_semantics<arbitrary>, #tpu.dimension_semantics<arbitrary>], iteration_bounds = array<i64: 1, 2, 1>, scalar_prefetch = 2 : i64, scratch_operands = 2 : i64, tpu.core_type = #tpu.core_type<tc>, window_params = [{transform_indices = @transform_0, window_bounds = array<i64: 1, 4, 384>}, {transform_indices = @transform_1, window_bounds = array<i64: 1, 4, 1>}, {transform_indices = @transform_2, window_bounds = array<i64: 1, 4, 1>}, {transform_indices = @transform_3, window_bounds = array<i64: 1, 4, 1>}, {transform_indices = @transform_4, window_bounds = array<i64: 1, 4, 1>}, {transform_indices = @transform_5, window_bounds = array<i64: 1, 4, 1>}, {transform_indices = @transform_6, window_bounds = array<i64: 1, 4, 1>}]} {
    %c0_i32 = arith.constant 0 : i32
    %0 = arith.cmpi eq, %arg1, %c0_i32 : i32
    %c0_i32_0 = arith.constant 0 : i32
    %1 = arith.cmpi eq, %arg2, %c0_i32_0 : i32
    %2 = arith.andi %0, %1 : i1
    %3 = arith.extui %2 : i1 to i32
    %c0_i32_1 = arith.constant 0 : i32
    %4 = arith.cmpi ne, %3, %c0_i32_1 : i32
    scf.if %4 {
      %cst = arith.constant 0.000000e+00 : f32
      %23 = vector.broadcast %cst : f32 to vector<4x128xf32>
      %c0 = arith.constant 0 : index
      %c0_8 = arith.constant 0 : index
      %24 = vector.load %arg12[%c0, %c0_8] : memref<4x128xf32, #tpu.memory_space<vmem>>, vector<4x128xf32>
      tpu.vector_store %arg12[%c0, %c0_8], %23 {strides = array<i32>} : memref<4x128xf32, #tpu.memory_space<vmem>>, vector<4x128xf32>,
      %cst_9 = arith.constant 0.000000e+00 : f32
      %25 = vector.broadcast %cst_9 : f32 to vector<4x128xf32>
      %c0_10 = arith.constant 0 : index
      %c0_11 = arith.constant 0 : index
      %26 = vector.load %arg13[%c0_10, %c0_11] : memref<4x128xf32, #tpu.memory_space<vmem>>, vector<4x128xf32>
      tpu.vector_store %arg13[%c0_10, %c0_11], %25 {strides = array<i32>} : memref<4x128xf32, #tpu.memory_space<vmem>>, vector<4x128xf32>,
    } else {
    }
    %5 = arith.index_cast %arg1 : i32 to index
    %6 = memref.load %arg3[%5] : memref<2xi32, #tpu.memory_space<smem>>
    %c384_i32 = arith.constant 384 : i32
    %7 = arith.muli %arg2, %c384_i32 : i32
    %c384_i32_2 = arith.constant 384 : i32
    %8 = arith.addi %7, %c384_i32_2 : i32
    %9 = arith.cmpi sle, %8, %6 : i32
    %10 = arith.extui %9 : i1 to i32
    %c0_i32_3 = arith.constant 0 : i32
    %11 = arith.cmpi ne, %10, %c0_i32_3 : i32
    scf.if %11 {
      %c0 = arith.constant 0 : index
      %c0_8 = arith.constant 0 : index
      %c0_9 = arith.constant 0 : index
      %23 = vector.load %arg5[%c0, %c0_8, %c0_9] : memref<1x4x384xf32, #tpu.memory_space<vmem>>, vector<1x4x128xf32>
      %24 = vector.shape_cast %23 : vector<1x4x128xf32> to vector<4x128xf32>
      %c0_10 = arith.constant 0 : index
      %c0_11 = arith.constant 0 : index
      %25 = vector.load %arg12[%c0_10, %c0_11] : memref<4x128xf32, #tpu.memory_space<vmem>>, vector<4x128xf32>
      %26 = arith.addf %25, %24 : vector<4x128xf32>
      %c0_12 = arith.constant 0 : index
      %c0_13 = arith.constant 0 : index
      %27 = vector.load %arg12[%c0_12, %c0_13] : memref<4x128xf32, #tpu.memory_space<vmem>>, vector<4x128xf32>
      tpu.vector_store %arg12[%c0_12, %c0_13], %26 {strides = array<i32>} : memref<4x128xf32, #tpu.memory_space<vmem>>, vector<4x128xf32>,
      %c0_14 = arith.constant 0 : index
      %c0_15 = arith.constant 0 : index
      %28 = vector.load %arg13[%c0_14, %c0_15] : memref<4x128xf32, #tpu.memory_space<vmem>>, vector<4x128xf32>
      %29 = arith.mulf %24, %24 : vector<4x128xf32>
      %30 = arith.addf %28, %29 : vector<4x128xf32>
      %c0_16 = arith.constant 0 : index
      %c0_17 = arith.constant 0 : index
      %31 = vector.load %arg13[%c0_16, %c0_17] : memref<4x128xf32, #tpu.memory_space<vmem>>, vector<4x128xf32>
      tpu.vector_store %arg13[%c0_16, %c0_17], %30 {strides = array<i32>} : memref<4x128xf32, #tpu.memory_space<vmem>>, vector<4x128xf32>,
      %c0_18 = arith.constant 0 : index
      %c0_19 = arith.constant 0 : index
      %c128 = arith.constant 128 : index
      %32 = vector.load %arg5[%c0_18, %c0_19, %c128] : memref<1x4x384xf32, #tpu.memory_space<vmem>>, vector<1x4x128xf32>
      %33 = vector.shape_cast %32 : vector<1x4x128xf32> to vector<4x128xf32>
      %c0_20 = arith.constant 0 : index
      %c0_21 = arith.constant 0 : index
      %34 = vector.load %arg12[%c0_20, %c0_21] : memref<4x128xf32, #tpu.memory_space<vmem>>, vector<4x128xf32>
      %35 = arith.addf %34, %33 : vector<4x128xf32>
      %c0_22 = arith.constant 0 : index
      %c0_23 = arith.constant 0 : index
      %36 = vector.load %arg12[%c0_22, %c0_23] : memref<4x128xf32, #tpu.memory_space<vmem>>, vector<4x128xf32>
      tpu.vector_store %arg12[%c0_22, %c0_23], %35 {strides = array<i32>} : memref<4x128xf32, #tpu.memory_space<vmem>>, vector<4x128xf32>,
      %c0_24 = arith.constant 0 : index
      %c0_25 = arith.constant 0 : index
      %37 = vector.load %arg13[%c0_24, %c0_25] : memref<4x128xf32, #tpu.memory_space<vmem>>, vector<4x128xf32>
      %38 = arith.mulf %33, %33 : vector<4x128xf32>
      %39 = arith.addf %37, %38 : vector<4x128xf32>
      %c0_26 = arith.constant 0 : index
      %c0_27 = arith.constant 0 : index
      %40 = vector.load %arg13[%c0_26, %c0_27] : memref<4x128xf32, #tpu.memory_space<vmem>>, vector<4x128xf32>
      tpu.vector_store %arg13[%c0_26, %c0_27], %39 {strides = array<i32>} : memref<4x128xf32, #tpu.memory_space<vmem>>, vector<4x128xf32>,
      %c0_28 = arith.constant 0 : index
      %c0_29 = arith.constant 0 : index
      %c256 = arith.constant 256 : index
      %41 = vector.load %arg5[%c0_28, %c0_29, %c256] : memref<1x4x384xf32, #tpu.memory_space<vmem>>, vector<1x4x128xf32>
      %42 = vector.shape_cast %41 : vector<1x4x128xf32> to vector<4x128xf32>
      %c0_30 = arith.constant 0 : index
      %c0_31 = arith.constant 0 : index
      %43 = vector.load %arg12[%c0_30, %c0_31] : memref<4x128xf32, #tpu.memory_space<vmem>>, vector<4x128xf32>
      %44 = arith.addf %43, %42 : vector<4x128xf32>
      %c0_32 = arith.constant 0 : index
      %c0_33 = arith.constant 0 : index
      %45 = vector.load %arg12[%c0_32, %c0_33] : memref<4x128xf32, #tpu.memory_space<vmem>>, vector<4x128xf32>
      tpu.vector_store %arg12[%c0_32, %c0_33], %44 {strides = array<i32>} : memref<4x128xf32, #tpu.memory_space<vmem>>, vector<4x128xf32>,
      %c0_34 = arith.constant 0 : index
      %c0_35 = arith.constant 0 : index
      %46 = vector.load %arg13[%c0_34, %c0_35] : memref<4x128xf32, #tpu.memory_space<vmem>>, vector<4x128xf32>
      %47 = arith.mulf %42, %42 : vector<4x128xf32>
      %48 = arith.addf %46, %47 : vector<4x128xf32>
      %c0_36 = arith.constant 0 : index
      %c0_37 = arith.constant 0 : index
      %49 = vector.load %arg13[%c0_36, %c0_37] : memref<4x128xf32, #tpu.memory_space<vmem>>, vector<4x128xf32>
      tpu.vector_store %arg13[%c0_36, %c0_37], %48 {strides = array<i32>} : memref<4x128xf32, #tpu.memory_space<vmem>>, vector<4x128xf32>,
    } else {
    }
    %12 = arith.cmpi slt, %7, %6 : i32
    %c384_i32_4 = arith.constant 384 : i32
    %13 = arith.addi %7, %c384_i32_4 : i32
    %14 = arith.cmpi sgt, %13, %6 : i32
    %15 = arith.andi %12, %14 : i1
    %16 = arith.extui %15 : i1 to i32
    %c0_i32_5 = arith.constant 0 : i32
    %17 = arith.cmpi ne, %16, %c0_i32_5 : i32
    scf.if %17 {
      %23 = tpu.iota {dimensions = array<i32: 1>} : vector<4x128xi32>
      %c0 = arith.constant 0 : index
      %c0_8 = arith.constant 0 : index
      %c0_9 = arith.constant 0 : index
      %24 = vector.load %arg5[%c0, %c0_8, %c0_9] : memref<1x4x384xf32, #tpu.memory_space<vmem>>, vector<1x4x128xf32>
      %25 = vector.shape_cast %24 : vector<1x4x128xf32> to vector<4x128xf32>
      %26 = arith.subi %6, %7 : i32
      %c0_i32_10 = arith.constant 0 : i32
      %27 = arith.subi %26, %c0_i32_10 : i32
      %28 = vector.broadcast %27 : i32 to vector<4x128xi32>
      %29 = arith.cmpi slt, %23, %28 : vector<4x128xi32>
      %cst = arith.constant 0.000000e+00 : f32
      %30 = vector.broadcast %cst : f32 to vector<4x128xf32>
      %31 = arith.select %29, %25, %30 : vector<4x128xi1>, vector<4x128xf32>
      %c0_11 = arith.constant 0 : index
      %c0_12 = arith.constant 0 : index
      %32 = vector.load %arg12[%c0_11, %c0_12] : memref<4x128xf32, #tpu.memory_space<vmem>>, vector<4x128xf32>
      %33 = arith.addf %32, %31 : vector<4x128xf32>
      %c0_13 = arith.constant 0 : index
      %c0_14 = arith.constant 0 : index
      %34 = vector.load %arg12[%c0_13, %c0_14] : memref<4x128xf32, #tpu.memory_space<vmem>>, vector<4x128xf32>
      tpu.vector_store %arg12[%c0_13, %c0_14], %33 {strides = array<i32>} : memref<4x128xf32, #tpu.memory_space<vmem>>, vector<4x128xf32>,
      %c0_15 = arith.constant 0 : index
      %c0_16 = arith.constant 0 : index
      %35 = vector.load %arg13[%c0_15, %c0_16] : memref<4x128xf32, #tpu.memory_space<vmem>>, vector<4x128xf32>
      %36 = arith.mulf %31, %31 : vector<4x128xf32>
      %37 = arith.addf %35, %36 : vector<4x128xf32>
      %c0_17 = arith.constant 0 : index
      %c0_18 = arith.constant 0 : index
      %38 = vector.load %arg13[%c0_17, %c0_18] : memref<4x128xf32, #tpu.memory_space<vmem>>, vector<4x128xf32>
      tpu.vector_store %arg13[%c0_17, %c0_18], %37 {strides = array<i32>} : memref<4x128xf32, #tpu.memory_space<vmem>>, vector<4x128xf32>,
      %c0_19 = arith.constant 0 : index
      %c0_20 = arith.constant 0 : index
      %c128 = arith.constant 128 : index
      %39 = vector.load %arg5[%c0_19, %c0_20, %c128] : memref<1x4x384xf32, #tpu.memory_space<vmem>>, vector<1x4x128xf32>
      %40 = vector.shape_cast %39 : vector<1x4x128xf32> to vector<4x128xf32>
      %41 = arith.subi %6, %7 : i32
      %c128_i32 = arith.constant 128 : i32
      %42 = arith.subi %41, %c128_i32 : i32
      %43 = vector.broadcast %42 : i32 to vector<4x128xi32>
      %44 = arith.cmpi slt, %23, %43 : vector<4x128xi32>
      %cst_21 = arith.constant 0.000000e+00 : f32
      %45 = vector.broadcast %cst_21 : f32 to vector<4x128xf32>
      %46 = arith.select %44, %40, %45 : vector<4x128xi1>, vector<4x128xf32>
      %c0_22 = arith.constant 0 : index
      %c0_23 = arith.constant 0 : index
      %47 = vector.load %arg12[%c0_22, %c0_23] : memref<4x128xf32, #tpu.memory_space<vmem>>, vector<4x128xf32>
      %48 = arith.addf %47, %46 : vector<4x128xf32>
      %c0_24 = arith.constant 0 : index
      %c0_25 = arith.constant 0 : index
      %49 = vector.load %arg12[%c0_24, %c0_25] : memref<4x128xf32, #tpu.memory_space<vmem>>, vector<4x128xf32>
      tpu.vector_store %arg12[%c0_24, %c0_25], %48 {strides = array<i32>} : memref<4x128xf32, #tpu.memory_space<vmem>>, vector<4x128xf32>,
      %c0_26 = arith.constant 0 : index
      %c0_27 = arith.constant 0 : index
      %50 = vector.load %arg13[%c0_26, %c0_27] : memref<4x128xf32, #tpu.memory_space<vmem>>, vector<4x128xf32>
      %51 = arith.mulf %46, %46 : vector<4x128xf32>
      %52 = arith.addf %50, %51 : vector<4x128xf32>
      %c0_28 = arith.constant 0 : index
      %c0_29 = arith.constant 0 : index
      %53 = vector.load %arg13[%c0_28, %c0_29] : memref<4x128xf32, #tpu.memory_space<vmem>>, vector<4x128xf32>
      tpu.vector_store %arg13[%c0_28, %c0_29], %52 {strides = array<i32>} : memref<4x128xf32, #tpu.memory_space<vmem>>, vector<4x128xf32>,
      %c0_30 = arith.constant 0 : index
      %c0_31 = arith.constant 0 : index
      %c256 = arith.constant 256 : index
      %54 = vector.load %arg5[%c0_30, %c0_31, %c256] : memref<1x4x384xf32, #tpu.memory_space<vmem>>, vector<1x4x128xf32>
      %55 = vector.shape_cast %54 : vector<1x4x128xf32> to vector<4x128xf32>
      %56 = arith.subi %6, %7 : i32
      %c256_i32 = arith.constant 256 : i32
      %57 = arith.subi %56, %c256_i32 : i32
      %58 = vector.broadcast %57 : i32 to vector<4x128xi32>
      %59 = arith.cmpi slt, %23, %58 : vector<4x128xi32>
      %cst_32 = arith.constant 0.000000e+00 : f32
      %60 = vector.broadcast %cst_32 : f32 to vector<4x128xf32>
      %61 = arith.select %59, %55, %60 : vector<4x128xi1>, vector<4x128xf32>
      %c0_33 = arith.constant 0 : index
      %c0_34 = arith.constant 0 : index
      %62 = vector.load %arg12[%c0_33, %c0_34] : memref<4x128xf32, #tpu.memory_space<vmem>>, vector<4x128xf32>
      %63 = arith.addf %62, %61 : vector<4x128xf32>
      %c0_35 = arith.constant 0 : index
      %c0_36 = arith.constant 0 : index
      %64 = vector.load %arg12[%c0_35, %c0_36] : memref<4x128xf32, #tpu.memory_space<vmem>>, vector<4x128xf32>
      tpu.vector_store %arg12[%c0_35, %c0_36], %63 {strides = array<i32>} : memref<4x128xf32, #tpu.memory_space<vmem>>, vector<4x128xf32>,
      %c0_37 = arith.constant 0 : index
      %c0_38 = arith.constant 0 : index
      %65 = vector.load %arg13[%c0_37, %c0_38] : memref<4x128xf32, #tpu.memory_space<vmem>>, vector<4x128xf32>
      %66 = arith.mulf %61, %61 : vector<4x128xf32>
      %67 = arith.addf %65, %66 : vector<4x128xf32>
      %c0_39 = arith.constant 0 : index
      %c0_40 = arith.constant 0 : index
      %68 = vector.load %arg13[%c0_39, %c0_40] : memref<4x128xf32, #tpu.memory_space<vmem>>, vector<4x128xf32>
      tpu.vector_store %arg13[%c0_39, %c0_40], %67 {strides = array<i32>} : memref<4x128xf32, #tpu.memory_space<vmem>>, vector<4x128xf32>,
    } else {
    }
    %c1_i32 = arith.constant 1 : i32
    %18 = arith.cmpi eq, %arg1, %c1_i32 : i32
    %c0_i32_6 = arith.constant 0 : i32
    %19 = arith.cmpi eq, %arg2, %c0_i32_6 : i32
    %20 = arith.andi %18, %19 : i1
    %21 = arith.extui %20 : i1 to i32
    %c0_i32_7 = arith.constant 0 : i32
    %22 = arith.cmpi ne, %21, %c0_i32_7 : i32
    scf.if %22 {
      %c0 = arith.constant 0 : index
      %23 = memref.load %arg4[%c0] : memref<1xi32, #tpu.memory_space<smem>>
      %24 = arith.sitofp %23 : i32 to f32
      %cst = arith.constant 1.000000e+00 : f32
      %25 = arith.maximumf %24, %cst : f32
      %c0_8 = arith.constant 0 : index
      %c0_9 = arith.constant 0 : index
      %26 = vector.load %arg12[%c0_8, %c0_9] : memref<4x128xf32, #tpu.memory_space<vmem>>, vector<4x128xf32>
      %cst_10 = arith.constant dense<0.000000e+00> : vector<4xf32>
      %27 = vector.multi_reduction <add>, %26, %cst_10 [1] : vector<4x128xf32> to vector<4xf32>
      %28 = vector.shape_cast %27 : vector<4xf32> to vector<4x1xf32>
      %c0_11 = arith.constant 0 : index
      %c0_12 = arith.constant 0 : index
      %29 = vector.load %arg13[%c0_11, %c0_12] : memref<4x128xf32, #tpu.memory_space<vmem>>, vector<4x128xf32>
      %cst_13 = arith.constant dense<0.000000e+00> : vector<4xf32>
      %30 = vector.multi_reduction <add>, %29, %cst_13 [1] : vector<4x128xf32> to vector<4xf32>
      %31 = vector.shape_cast %30 : vector<4xf32> to vector<4x1xf32>
      %32 = vector.broadcast %25 : f32 to vector<4x1xf32>
      %33 = arith.divf %28, %32 : vector<4x1xf32>
      %34 = vector.broadcast %25 : f32 to vector<4x1xf32>
      %35 = arith.divf %31, %34 : vector<4x1xf32>
      %36 = arith.mulf %33, %33 : vector<4x1xf32>
      %37 = arith.subf %35, %36 : vector<4x1xf32>
      %cst_14 = arith.constant 0.000000e+00 : f32
      %38 = vector.broadcast %cst_14 : f32 to vector<4x1xf32>
      %39 = arith.maximumf %37, %38 : vector<4x1xf32>
      %cst_15 = arith.constant 9.99999974E-6 : f32
      %40 = vector.broadcast %cst_15 : f32 to vector<4x1xf32>
      %41 = arith.addf %39, %40 : vector<4x1xf32>
      %42 = math.rsqrt %41 : vector<4x1xf32>
      %c0_16 = arith.constant 0 : index
      %c0_17 = arith.constant 0 : index
      %c0_18 = arith.constant 0 : index
      %43 = vector.load %arg6[%c0_16, %c0_17, %c0_18] : memref<1x4x1xf32, #tpu.memory_space<vmem>>, vector<1x4x1xf32>
      %44 = vector.shape_cast %43 : vector<1x4x1xf32> to vector<4x1xf32>
      %45 = math.exp %44 : vector<4x1xf32>
      %46 = arith.mulf %42, %45 : vector<4x1xf32>
      %c0_19 = arith.constant 0 : index
      %c0_20 = arith.constant 0 : index
      %c0_21 = arith.constant 0 : index
      %47 = vector.load %arg7[%c0_19, %c0_20, %c0_21] : memref<1x4x1xf32, #tpu.memory_space<vmem>>, vector<1x4x1xf32>
      %48 = vector.shape_cast %47 : vector<1x4x1xf32> to vector<4x1xf32>
      %49 = arith.mulf %33, %46 : vector<4x1xf32>
      %50 = arith.subf %48, %49 : vector<4x1xf32>
      %c0_22 = arith.constant 0 : index
      %c0_23 = arith.constant 0 : index
      %c0_24 = arith.constant 0 : index
      %51 = vector.load %arg8[%c0_22, %c0_23, %c0_24] : memref<1x4x1xf32, #tpu.memory_space<vmem>>, vector<1x4x1xf32>
      %52 = vector.shape_cast %51 : vector<1x4x1xf32> to vector<4x1xf32>
      %53 = vector.shape_cast %33 : vector<4x1xf32> to vector<1x4x1xf32>
      tpu.vector_store %arg8[%c0_22, %c0_23, %c0_24], %53 {strides = array<i32>} : memref<1x4x1xf32, #tpu.memory_space<vmem>>, vector<1x4x1xf32>,
      %c0_25 = arith.constant 0 : index
      %c0_26 = arith.constant 0 : index
      %c0_27 = arith.constant 0 : index
      %54 = vector.load %arg9[%c0_25, %c0_26, %c0_27] : memref<1x4x1xf32, #tpu.memory_space<vmem>>, vector<1x4x1xf32>
      %55 = vector.shape_cast %54 : vector<1x4x1xf32> to vector<4x1xf32>
      %56 = vector.shape_cast %39 : vector<4x1xf32> to vector<1x4x1xf32>
      tpu.vector_store %arg9[%c0_25, %c0_26, %c0_27], %56 {strides = array<i32>} : memref<1x4x1xf32, #tpu.memory_space<vmem>>, vector<1x4x1xf32>,
      %c0_28 = arith.constant 0 : index
      %c0_29 = arith.constant 0 : index
      %c0_30 = arith.constant 0 : index
      %57 = vector.load %arg10[%c0_28, %c0_29, %c0_30] : memref<1x4x1xf32, #tpu.memory_space<vmem>>, vector<1x4x1xf32>
      %58 = vector.shape_cast %57 : vector<1x4x1xf32> to vector<4x1xf32>
      %59 = vector.shape_cast %46 : vector<4x1xf32> to vector<1x4x1xf32>
      tpu.vector_store %arg10[%c0_28, %c0_29, %c0_30], %59 {strides = array<i32>} : memref<1x4x1xf32, #tpu.memory_space<vmem>>, vector<1x4x1xf32>,
      %c0_31 = arith.constant 0 : index
      %c0_32 = arith.constant 0 : index
      %c0_33 = arith.constant 0 : index
      %60 = vector.load %arg11[%c0_31, %c0_32, %c0_33] : memref<1x4x1xf32, #tpu.memory_space<vmem>>, vector<1x4x1xf32>
      %61 = vector.shape_cast %60 : vector<1x4x1xf32> to vector<4x1xf32>
      %62 = vector.shape_cast %50 : vector<4x1xf32> to vector<1x4x1xf32>
      tpu.vector_store %arg11[%c0_31, %c0_32, %c0_33], %62 {strides = array<i32>} : memref<1x4x1xf32, #tpu.memory_space<vmem>>, vector<1x4x1xf32>,
    } else {
    }
    return
  }
  func.func @transform_0(%arg0: i32, %arg1: i32, %arg2: i32, %arg3: memref<2xi32, #tpu.memory_space<smem>>, %arg4: memref<1xi32, #tpu.memory_space<smem>>) -> (i32, i32, i32) {
    %c0_i32 = arith.constant 0 : i32
    return %arg1, %arg0, %arg2 : i32, i32, i32
  }
  func.func @transform_1(%arg0: i32, %arg1: i32, %arg2: i32, %arg3: memref<2xi32, #tpu.memory_space<smem>>, %arg4: memref<1xi32, #tpu.memory_space<smem>>) -> (i32, i32, i32) {
    %c0_i32 = arith.constant 0 : i32
    %c0_i32_0 = arith.constant 0 : i32
    %c0_i32_1 = arith.constant 0 : i32
    return %c0_i32, %arg0, %c0_i32_0 : i32, i32, i32
  }
  func.func @transform_2(%arg0: i32, %arg1: i32, %arg2: i32, %arg3: memref<2xi32, #tpu.memory_space<smem>>, %arg4: memref<1xi32, #tpu.memory_space<smem>>) -> (i32, i32, i32) {
    %c0_i32 = arith.constant 0 : i32
    %c0_i32_0 = arith.constant 0 : i32
    %c0_i32_1 = arith.constant 0 : i32
    return %c0_i32, %arg0, %c0_i32_0 : i32, i32, i32
  }
  func.func @transform_3(%arg0: i32, %arg1: i32, %arg2: i32, %arg3: memref<2xi32, #tpu.memory_space<smem>>, %arg4: memref<1xi32, #tpu.memory_space<smem>>) -> (i32, i32, i32) {
    %c0_i32 = arith.constant 0 : i32
    %c0_i32_0 = arith.constant 0 : i32
    %c0_i32_1 = arith.constant 0 : i32
    return %c0_i32, %arg0, %c0_i32_0 : i32, i32, i32
  }
  func.func @transform_4(%arg0: i32, %arg1: i32, %arg2: i32, %arg3: memref<2xi32, #tpu.memory_space<smem>>, %arg4: memref<1xi32, #tpu.memory_space<smem>>) -> (i32, i32, i32) {
    %c0_i32 = arith.constant 0 : i32
    %c0_i32_0 = arith.constant 0 : i32
    %c0_i32_1 = arith.constant 0 : i32
    return %c0_i32, %arg0, %c0_i32_0 : i32, i32, i32
  }
  func.func @transform_5(%arg0: i32, %arg1: i32, %arg2: i32, %arg3: memref<2xi32, #tpu.memory_space<smem>>, %arg4: memref<1xi32, #tpu.memory_space<smem>>) -> (i32, i32, i32) {
    %c0_i32 = arith.constant 0 : i32
    %c0_i32_0 = arith.constant 0 : i32
    %c0_i32_1 = arith.constant 0 : i32
    return %c0_i32, %arg0, %c0_i32_0 : i32, i32, i32
  }
  func.func @transform_6(%arg0: i32, %arg1: i32, %arg2: i32, %arg3: memref<2xi32, #tpu.memory_space<smem>>, %arg4: memref<1xi32, #tpu.memory_space<smem>>) -> (i32, i32, i32) {
    %c0_i32 = arith.constant 0 : i32
    %c0_i32_0 = arith.constant 0 : i32
    %c0_i32_1 = arith.constant 0 : i32
    return %c0_i32, %arg0, %c0_i32_0 : i32, i32, i32
  }
}

</mosaic_0001>

<bundles_post_ra>
// kernel: tpu_custom_call.1
= control target key start
LH: loop header
LB: loop body
LE: loop exit
PB: predicated region body
PF: predicated region fallthrough
CT: control target
= control target key end

     0   :  { %s895_s10 = smov [#allocation5]   ;;  %s1070_s0 = inlined_call_operand.vmem [shape: s32[2], index: 0, kind: input, shape index: {}]   ;;  %s1071_s1 = inlined_call_operand.<no memory space> [shape: s32[1], index: 1, kind: input, shape index: {}]   ;;  %s1072_s2 = inlined_call_operand.hbm [shape: f32[2,4,384], index: 2, kind: input, shape index: {}]   ;;  %s1073_s3 = inlined_call_operand.vmem [shape: f32[1,4,1], index: 3, kind: input, shape index: {}]   ;;  %s1074_s4 = inlined_call_operand.vmem [shape: f32[1,4,1], index: 4, kind: input, shape index: {}]   ;;  %s1075_s5 = inlined_call_operand.vmem [shape: f32[1,4,1], index: 5, kind: output, shape index: {0}]   ;;  %s1076_s6 = inlined_call_operand.vmem [shape: f32[1,4,1], index: 6, kind: output, shape index: {1}]   ;;  %s1077_s7 = inlined_call_operand.vmem [shape: f32[1,4,1], index: 7, kind: output, shape index: {2}]   ;;  %s1078_s8 = inlined_call_operand.vmem [shape: f32[1,4,1], index: 8, kind: output, shape index: {3}]  }
   0x1   :  { %s15_s29 = sshll.u32 %s1070_s0, 4  ;;  %19 = sst [smem:[#allocation6]] %s1071_s1  ;;  %s16_s29 = int_to_ptr.vmem [resolvable:$true] %s15_s29 }
   0x2   :  { %18 = dma.vmem_to_smem %s16_s29, 16, %s895_s10, [#allocation4] }
   0x3   :  { %865 = dma.done.wait [#allocation4], 16 }
   0x4   :  { %866 = vsyncadd [#allocation4], 4294967280 }
   0x5   :  { %22 = sfence }
   0x6   :  { %23 = vsyncpa [#allocation8], 0 }
   0x7   :  { %25 = vsyncpa [#allocation8 + $0x1], 0  ;;  %s949_s11 = smov 0   ;;  %s951_s12 = smov 0  }
   0x8   :  { %s953_s13 = smov 0   ;;  %s955_s14 = smov 0  }
   0x9   :  { %s957_s0 = smov 0   ;;  %s959_s15 = smov 0  }
   0xa LB: > { %s709_s1 = sadd.s32 4294967295, %s893_s15   ;;  %s46_s16 = sadd.s32 1, %s889_s0  ;;  %s893_s15 = sphi %s959_s15, %s31_s15   ;;  %s889_s0 = sphi %s957_s0, %s1084_s0   ;;  %s885_s14 = sphi %s955_s14, %s1083_s14   ;;  %s881_s13 = sphi %s953_s13, %s1082_s13   ;;  %s877_s12 = sphi %s951_s12, %s1081_s12   ;;  %s873_s11 = sphi %s949_s11, %s1080_s11  }
   0xb   : > { %p48_p0 = scmp.ge.s32.totalorder %s46_s16, 2  ;;  %s61_s17 = sadd.s32 1, %s881_s13 }
   0xc   : > { %p68_p1 = scmp.ne.s32.totalorder %s881_s13, %s877_s12  ;;  %p69_p2 = scmp.eq.s32.totalorder %s893_s15, 0 }
   0xd   : > { %s1086_s16 = smov (%p48_p0, %s46_s16), 0  ;;  %p74_p4 = scmp.ne.s32.totalorder %s877_s12, %s873_s11 }
   0xe   : > { %p70_p3 = por %p69_p2, %p68_p1  ;;  %s54_s18 = ssub.s32 %s889_s0, %s1086_s16 }
   0xf   : > { %p75_p5 = scmp.eq.s32.totalorder %s709_s1, 0  ;;  %p59_p6 = scmp.eq.s32.totalorder %s54_s18, 0 }
  0x10   : > { %p741_p8 = scmp.lt.s32.totalorder %s893_s15, 2  ;;  %s268_s21 = sand.u32 1, %s881_s13  }
  0x11   : > { %p988_p7 = por %p75_p5, %p74_p4  ;;  %s733_s22 = smul.u32 12, %s889_s0 }
  0x12   : > { %s994_s20 = scalar_select %p59_p6, %s881_s13, %s61_s17  }
  0x13   : > { %s732_s23 = smul.u32 12, %s268_s21  ;;  %s281_s26 = scalar_lea.hbm %s1072_s2, %s733_s22 }
  0x14   : > { %p738_p9 = pnand %p741_p8, %p70_p3  ;;  %s283_s27 = sshll.u32 %s281_s26, 4  ;;  %s284_s27 = int_to_ptr.hbm [resolvable:$true] %s283_s27 }
  0x15   : > { %s272_s28 = scalar_lea.vmem [#allocation7], %s732_s23  ;;  %s269_s30 = scalar_lea.sflag [#allocation8], %s268_s21 }
  0x16   : > { %s285_s29 = sshll.u32 %s272_s28, 4  ;;  %p715_p10 = scmp.ge.s32.totalorder %s893_s15, 1  ;;  %s286_s29 = int_to_ptr.vmem [resolvable:$true] %s285_s29 }
  0x17   : > { %740 = dma.hbm_to_vmem [thread:$0]  (!%p738_p9), %s284_s27, 192, %s286_s29, %s269_s30  }
  0x18   : > { %p290_p11 = scmp.lt.s32.totalorder %s893_s15, 3 }
  0x1a   : > { %p291_p12 = pnand %p715_p10, %p290_p11 }
  0x1b   : > { %s296_s9 = sand.u32 (!%p291_p12), 1, %s877_s12  }
  0x1c   : > { %294 = sbr.rel (%p291_p12) target bundleno = 283 (0x11b), region = 32  ;;  %s297_s11 = scalar_lea.sflag (!%p291_p12), [#allocation8], %s296_s9 }
  0x1d   : > { %s734_s10 = smul.u32 (!%p291_p12), 12, %s296_s9 }
  0x1f   : > { %s1004_s1 = scalar_lea.vmem (!%p291_p12), [#allocation7], %s734_s10 }
  0x21   : > { %868 = dma.done.wait (%p988_p7), %s297_s11, 192  }
  0x22   : > { %870 = vsyncadd (%p988_p7), %s297_s11, 4294967104  ;;  %p374_p13 = scmp.eq.s32.totalorder %s885_s14, 0 }
  0x23   : > { %v896_v0 = vmov (%p374_p13), 0.0  }
  0x24   : > { %379 = sbr.rel (!%p374_p13) target bundleno = 41 (0x29), region = 40  ;;  %380 = vst [vmem:[#allocation2] sm:$0xf] (%p374_p13), %v896_v0 }
  0x25   : > { %381 = vst [vmem:[#allocation3] sm:$0xf] (%p374_p13), %v896_v0 }
  0x29 PF: > { %s1012_s17 = sld [smem:[#allocation5 + %s885_s14]] }
  0x2f   : > { %p718_p0 = scmp.lt.s32.totalorder %s1012_s17, 384 }
  0x31   : > { %388 = sbr.rel (%p718_p0) target bundleno = 80 (0x50), region = 44 }
  0x36   : > { %v389_v1 = vld [vmem:[%s1004_s1] sm:$0xf]  ;;  %v390_v2 = vld [vmem:[#allocation2] sm:$0xf]  ;;  %v393_v3 = vld [vmem:[#allocation3] sm:$0xf] }
  0x37   : > { %v391_v4 = vadd.f32 %v390_v2, %v389_v1  ;;  %v394_v5 = vmul.f32 %v389_v1, %v389_v1  ;;  %v397_v7 = vld [vmem:[%s1004_s1 + $0x4] sm:$0xf]  ;;  %v405_v13 = vld [vmem:[%s1004_s1 + $0x8] sm:$0xf] }
  0x38   : > { %v402_v8 = vmul.f32 %v397_v7, %v397_v7  ;;  %v410_v14 = vmul.f32 %v405_v13, %v405_v13 }
  0x39   : > { %392 = vst [vmem:[#allocation2] sm:$0xf] %v391_v4  ;;  %v395_v6 = vadd.f32 %v394_v5, %v393_v3 }
  0x3b   : > { %396 = vst [vmem:[#allocation3] sm:$0xf] %v395_v6 }
  0x40   : > { %v398_v9 = vld [vmem:[#allocation2] sm:$0xf] }
  0x41   : > { %v399_v10 = vadd.f32 %v398_v9, %v397_v7 }
  0x42   : > { %v401_v11 = vld [vmem:[#allocation3] sm:$0xf] }
  0x43   : > { %400 = vst [vmem:[#allocation2] sm:$0xf] %v399_v10  ;;  %v403_v12 = vadd.f32 %v402_v8, %v401_v11 }
  0x45   : > { %404 = vst [vmem:[#allocation3] sm:$0xf] %v403_v12 }
  0x4a   : > { %v406_v15 = vld [vmem:[#allocation2] sm:$0xf] }
  0x4b   : > { %v407_v16 = vadd.f32 %v406_v15, %v405_v13 }
  0x4c   : > { %v409_v17 = vld [vmem:[#allocation3] sm:$0xf] }
  0x4d   : > { %408 = vst [vmem:[#allocation2] sm:$0xf] %v407_v16  ;;  %v411_v18 = vadd.f32 %v410_v14, %v409_v17 }
  0x4f   : > { %412 = vst [vmem:[#allocation3] sm:$0xf] %v411_v18 }
  0x50 PF: > { %p719_p1 = scmp.gt.s32.totalorder %s1012_s17, 0 }
  0x52   : > { %p415_p2 = pnand %p719_p1, %p718_p0 }
  0x53   : > { %s721_s18 = sadd.s32 (!%p415_p2), 4294967168, %s1012_s17  ;;  %s722_s19 = sadd.s32 (!%p415_p2), 4294967040, %s1012_s17 }
  0x54   : > { %418 = sbr.rel (%p415_p2) target bundleno = 120 (0x78), region = 48 }
  0x59   : > { %v419_v19 = vlaneseq  ;;  %v423_v20 = vstv %s1012_s17  ;;  %v421_v22 = vld [vmem:[%s1004_s1] sm:$0xf]  ;;  %v426_v23 = vld [vmem:[#allocation2] sm:$0xf]  ;;  %v429_v25 = vld [vmem:[#allocation3] sm:$0xf]  ;;  %v435_v26 = vstv %s721_s18  ;;  %v447_v34 = vstv %s722_s19 }
  0x5a   : > { %v433_v30 = vld [vmem:[%s1004_s1 + $0x4] sm:$0xf]  ;;  %v445_v38 = vld [vmem:[%s1004_s1 + $0x8] sm:$0xf] }
  0x5b   : > { %v420_v21 = vand.u32 127, %v419_v19 }
  0x5d   : > { %vm424_vm0 = vcmp.lt.s32.totalorder %v420_v21, %v423_v20  ;;  %vm436_vm1 = vcmp.lt.s32.totalorder %v420_v21, %v435_v26  ;;  %vm448_vm2 = vcmp.lt.s32.totalorder %v420_v21, %v447_v34 }
  0x5e   : > { %v425_v24 = vsel %vm424_vm0, %v421_v22, 0.0  ;;  %v437_v31 = vsel %vm436_vm1, %v433_v30, 0.0  ;;  %v449_v39 = vsel %vm448_vm2, %v445_v38, 0.0 }
  0x5f   : > { %v427_v27 = vadd.f32 %v426_v23, %v425_v24  ;;  %v430_v28 = vmul.f32 %v425_v24, %v425_v24  ;;  %v442_v32 = vmul.f32 %v437_v31, %v437_v31  ;;  %v454_v40 = vmul.f32 %v449_v39, %v449_v39 }
  0x61   : > { %428 = vst [vmem:[#allocation2] sm:$0xf] %v427_v27  ;;  %v431_v29 = vadd.f32 %v430_v28, %v429_v25 }
  0x63   : > { %432 = vst [vmem:[#allocation3] sm:$0xf] %v431_v29 }
  0x68   : > { %v438_v33 = vld [vmem:[#allocation2] sm:$0xf] }
  0x69   : > { %v439_v35 = vadd.f32 %v438_v33, %v437_v31 }
  0x6a   : > { %v441_v36 = vld [vmem:[#allocation3] sm:$0xf] }
  0x6b   : > { %440 = vst [vmem:[#allocation2] sm:$0xf] %v439_v35  ;;  %v443_v37 = vadd.f32 %v442_v32, %v441_v36 }
  0x6d   : > { %444 = vst [vmem:[#allocation3] sm:$0xf] %v443_v37 }
  0x72   : > { %v450_v41 = vld [vmem:[#allocation2] sm:$0xf] }
  0x73   : > { %v451_v42 = vadd.f32 %v450_v41, %v449_v39 }
  0x74   : > { %v453_v43 = vld [vmem:[#allocation3] sm:$0xf] }
  0x75   : > { %452 = vst [vmem:[#allocation2] sm:$0xf] %v451_v42  ;;  %v455_v44 = vadd.f32 %v454_v40, %v453_v43 }
  0x77   : > { %456 = vst [vmem:[#allocation3] sm:$0xf] %v455_v44 }
  0x78 PF: > { %p457_p3 = scmp.eq.s32.totalorder %s885_s14, 1 }
  0x79   : > { %vm466_vm3 = vcmask (%p457_p3), 1043456   ;;  %s462_s21 = sld [smem:[#allocation6]] (%p457_p3)  ;;  %s897_s23 = smov (%p457_p3), 1.0   ;;  %vm512_vm8 = vcmask (%p457_p3), 3072   ;;  %v505_v4 = vld [vmem:[%s1073_s3] sm:$0xf] (%p457_p3) }
  0x7a   : > { %461 = sbr.rel (!%p457_p3) target bundleno = 283 (0x11b), region = 52  ;;  %v506_v5 = vmul.f32 (%p457_p3), 1.442695, %v505_v4  ;;  %v509_v15 = vld [vmem:[%s1074_s4] sm:$0xf] (%p457_p3) }
  0x7c   : > { %v465_v45 = vld [vmem:[#allocation2] sm:$0xf] (%p457_p3) }
  0x7d   : > { %v467_v46 = vsel (%p457_p3), %vm466_vm3, %v465_v45, 0.0 }
  0x7e   : > { %468 = vadd.xlane.f32.xlu0 (%p457_p3), %v467_v46  ;;  %v470_v47 = vld [vmem:[#allocation3] sm:$0xf] (%p457_p3) }
  0x7f   : > { %v471_v48 = vsel %vm466_vm3, %v470_v47, 0.0  ;;  %s463_s22 = scvt.s32.f32 %s462_s21 }
  0x81   : > { %s464_s24 = smax.f32 %s897_s23, %s463_s22 }
  0x82   : > { %v474_v49 = vstv %s464_s24 }
  0x83   : > { %793 = vrcp.f32 %v474_v49  ;;  %vm480_vm4 = vweird.f32 %v474_v49  ;;  %v486_v54 = vand.u32 2147483648, %v474_v49  ;;  %v484_v56 = vand.u32 2147483647, %v474_v49 }
  0x85   : > { %v487_v57 = vor.u32 1.1754944e-38, %v486_v54  ;;  %vm485_vm7 = vcmp.eq.f32.partialorder %v484_v56, 8.507059e+37 }
  0x86   : > { %472 = vadd.xlane.f32.xlu0 %v471_v48 }
  0x89   : > { %v794_v50 = vpop.eup %793 }
  0x8a   : > { %v476_v51 = vmul.f32 %v794_v50, %v474_v49  ;;  %vm481_vm5 = vweird.f32 %v794_v50 }
  0x8b   : > { %vm482_vm6 = vmor %vm480_vm4, %vm481_vm5 }
  0x8c   : > { %v477_v52 = vsub.f32 1.0, %v476_v51 }
  0x8e   : > { %v478_v53 = vmul.f32 %v794_v50, %v477_v52 }
  0x90   : > { %v479_v55 = vadd.f32 %v794_v50, %v478_v53 }
  0x92   : > { %v483_v58 = vsel %vm482_vm6, %v794_v50, %v479_v55 }
  0x93   : > { %v488_v59 = vsel %vm485_vm7, %v487_v57, %v483_v58 }
  0xf1   : > { %v469_v60 = vpop.xlane.xlu0 %468 }
  0xf2   : > { %v489_v61 = vmul.f32 %v488_v59, %v469_v60 }
  0xf4   : > { %513 = vst.msk [vmem:[%s1075_s5] sm:$0xf] %vm512_vm8, %v489_v61  ;;  %v491_v0 = vmul.f32 %v489_v61, %v489_v61 }
  0xf9   : > { %v473_v62 = vpop.xlane.xlu0 %472 }
  0xfa   : > { %v490_v63 = vmul.f32 %v488_v59, %v473_v62 }
  0xfc   : > { %v492_v1 = vsub.f32 %v490_v63, %v491_v0 }
  0xfe   : > { %v493_v2 = vmax.f32 %v492_v1, 0.0 }
 0x100   : > { %v494_v3 = vadd.f32 1e-05, %v493_v2  ;;  %514 = vst.msk [vmem:[%s1076_s6] sm:$0xf] %vm512_vm8, %v493_v2 }
 0x102   : > { %795 = vrsqrt.f32 %v494_v3  ;;  %vm501_vm10 = vweird.f32 %v494_v3 }
 0x103   : > { %797 = vpow2.f32 %v506_v5 }
 0x108   : > { %v796_v6 = vpop.eup %795 }
 0x109   : > { %v496_v7 = vmul.f32 %v796_v6, %v494_v3  ;;  %vm502_vm9 = vweird.f32 %v796_v6  ;;  %v798_v11 = vpop.eup %797 }
 0x10a   : > { %vm503_vm11 = vmor %vm501_vm10, %vm502_vm9 }
 0x10b   : > { %v497_v8 = vmul.f32 %v796_v6, %v496_v7 }
 0x10d   : > { %v498_v9 = vmul.f32 0.5, %v497_v8 }
 0x10f   : > { %v499_v10 = vsub.f32 1.5, %v498_v9 }
 0x111   : > { %v500_v12 = vmul.f32 %v796_v6, %v499_v10 }
 0x113   : > { %v504_v13 = vsel %vm503_vm11, %v796_v6, %v500_v12 }
 0x114   : > { %v508_v14 = vmul.f32 %v798_v11, %v504_v13 }
 0x116   : > { %v510_v16 = vmul.f32 %v508_v14, %v489_v61  ;;  %515 = vst.msk [vmem:[%s1077_s7] sm:$0xf] %vm512_vm8, %v508_v14 }
 0x118   : > { %v511_v17 = vsub.f32 %v509_v15, %v510_v16 }
 0x11a   : > { %516 = vst.msk [vmem:[%s1078_s8] sm:$0xf] %vm512_vm8, %v511_v17 }
 0x11b PF: > { %s31_s15 = sadd.s32 1, %s893_s15   ;;  %s1080_s11 = smov %s877_s12 }
 0x11c   : > { %p28_p4 = scmp.ge.s32.totalorder %s31_s15, 4   ;;  %s1081_s12 = smov %s881_s13 }
 0x11d   : > { %s1082_s13 = smov %s994_s20  ;;  %s1083_s14 = smov %s889_s0 }
 0x11e   : > { %s1084_s0 = smov %s1086_s16  ;;  %30 = sbr.rel (!%p28_p4) target bundleno = 10 (0xa), region = 130 }
 0x123   :  { %578 = vsyncpa [#allocation8], 1 }
 0x124   :  { %580 = vsyncpa [#allocation8 + $0x1], 1 }

</bundles_post_ra>
